<compile_context>
chip_gen: v7x
topology: tpu7x:2x2x1
jax: 0.10.0
libtpu: 0.0.40
codegen_flags: <defaults>
</compile_context>

<pallas_src>
import functools
import math

import jax
import jax.numpy as jnp
from jax.experimental import pallas as pl
from jax.experimental.pallas import tpu as pltpu


def _round_up(x, m):
    return ((x + m - 1) // m) * m


# ----------------------------- Pallas kernel ------------------------------ #
def _linear_kernel(x_ref, w_ref, b_ref, o_ref):
    # x_ref: (tm, K) bf16 token tile, w_ref: (K, Np) bf16 (VMEM-resident),
    # b_ref: (1, Np) f32, o_ref: (tm, Np) f32.
    # MXU matmul with f32 accumulation; f32 epilogue (bias add + store).
    acc = jnp.dot(x_ref[...], w_ref[...], preferred_element_type=jnp.float32)
    o_ref[...] = (acc + b_ref[...]).astype(o_ref.dtype)


def linear_pallas(x, w, b, *, tm=256, compute_dtype=jnp.bfloat16):
    """Per-token linear projection: x (M, K) f32, w (K, N) f32, b (N,) -> (M, N) f32."""
    M, K = x.shape
    K2, N = w.shape
    assert K == K2 and b.shape == (N,)

    # Lane-dense output width (multiple of 128 -> unmasked stores).
    n_pad = _round_up(N, 128)
    # Token tile: multiple of 128, no larger than the padded token count.
    tm = _round_up(min(tm, _round_up(M, 128)), 128)
    m_pad = _round_up(M, tm)

    x_p = jnp.pad(x, ((0, m_pad - M), (0, 0))).astype(compute_dtype)
    w_p = jnp.pad(w, ((0, 0), (0, n_pad - N))).astype(compute_dtype)
    b_p = jnp.pad(b, (0, n_pad - N)).reshape(1, n_pad).astype(jnp.float32)

    grid = (m_pad // tm,)

    # VMEM budget: double-buffered token/out tiles + resident weight/bias,
    # 2x headroom, clamped to stay well inside v7x's 64 MiB physical VMEM.
    cbytes = jnp.dtype(compute_dtype).itemsize
    est = (2 * tm * K * cbytes          # token tile (double-buffered)
           + 2 * K * n_pad * cbytes     # weight (worst case double-buffered)
           + 2 * n_pad * 4              # bias
           + 2 * tm * n_pad * 4)        # output tile (double-buffered)
    vmem_limit = int(min(max(2 * est, 16 * 1024 * 1024), 48 * 1024 * 1024))

    out = pl.pallas_call(
        _linear_kernel,
        out_shape=jax.ShapeDtypeStruct((m_pad, n_pad), jnp.float32),
        grid_spec=pltpu.PrefetchScalarGridSpec(
            num_scalar_prefetch=0,
            grid=grid,
            in_specs=[
                pl.BlockSpec((tm, K), lambda i: (i, 0)),      # token tile
                pl.BlockSpec((K, n_pad), lambda i: (0, 0)),   # weight, resident
                pl.BlockSpec((1, n_pad), lambda i: (0, 0)),   # bias, resident
            ],
            out_specs=pl.BlockSpec((tm, n_pad), lambda i: (i, 0)),
        ),
        compiler_params=pltpu.CompilerParams(
            dimension_semantics=("parallel",),   # shards token grid on v7x megacore
            vmem_limit_bytes=vmem_limit,
        ),
    )(x_p, w_p, b_p)
    return out[:M, :N]


# ------------------------------ Module glue ------------------------------- #
def extract_patches(images, patch_shape):
    """images (B, C, H, W) NCHW -> (B, num_patches, C*ph*pw).

    Matches kornia.contrib.extract_tensor_patches(window=stride=patch_shape)
    followed by .flatten(2): patches enumerated row-major over the spatial
    grid; each patch flattened in (C, ph, pw) order.
    """
    B, C, H, W = images.shape
    ph, pw = patch_shape
    assert H % ph == 0 and W % pw == 0
    gh, gw = H // ph, W // pw
    x = images.reshape(B, C, gh, ph, gw, pw)
    x = jnp.transpose(x, (0, 2, 4, 1, 3, 5))          # (B, gh, gw, C, ph, pw)
    return x.reshape(B, gh * gw, C * ph * pw)


@functools.partial(jax.jit, static_argnames=("patch_shape",))
def _flatten_embedding_forward(images, weight, bias, *, patch_shape):
    B = images.shape[0]
    patches = extract_patches(images, patch_shape)     # (B, P, K)
    P, K = patches.shape[1], patches.shape[2]
    tokens = patches.reshape(B * P, K)
    out = linear_pallas(tokens, weight, bias)          # (B*P, d_model)
    return out.reshape(B, P, weight.shape[1])


class FlattenEmbedding:
    """JAX/Pallas port of the PyTorch FlattenEmbedding module."""

    def __init__(self, channels, patch_shape, d_model, key):
        self.channels = channels
        self.patch_shape = tuple(patch_shape)
        self.d_model = d_model
        patch_pixels = channels * patch_shape[0] * patch_shape[1]

        # Deterministic init mirroring nn.Linear defaults:
        #   weight ~ U(-1/sqrt(fan_in), 1/sqrt(fan_in)), bias likewise.
        kw, kb = jax.random.split(key)
        bound = 1.0 / math.sqrt(patch_pixels)
        # kernel layout (K, N) = (patch_pixels, d_model)  (transpose of torch's)
        self.weight = jax.random.uniform(
            kw, (patch_pixels, d_model), jnp.float32, -bound, bound)
        self.bias = jax.random.uniform(
            kb, (d_model,), jnp.float32, -bound, bound)

    def __call__(self, images):
        return _flatten_embedding_forward(
            images, self.weight, self.bias, patch_shape=self.patch_shape)


# --------------------------------- main ----------------------------------- #
if __name__ == "__main__":
    key = jax.random.PRNGKey(0)
    k_img, k_param = jax.random.split(key)

    B, C, H, W = 2, 4, 16, 16
    patch_shape = (4, 4)
    d_model = 32

    images = jax.random.normal(k_img, (B, C, H, W), jnp.float32)  # NCHW

    module = FlattenEmbedding(C, patch_shape, d_model, k_param)
    out = module(images)
    out = jax.block_until_ready(out)

    # Reference check in plain JAX (f32); kernel uses bf16 inputs with f32
    # accumulation, so compare with a correspondingly loose tolerance.
    patches = extract_patches(images, patch_shape)
    ref = patches @ module.weight + module.bias
    P = (H // patch_shape[0]) * (W // patch_shape[1])
    assert out.shape == (B, P, d_model), out.shape
    assert jnp.allclose(out, ref, atol=5e-2, rtol=5e-2), float(
        jnp.max(jnp.abs(out - ref)))

    print("KERNEL_OK")
</pallas_src>

<mosaic_0001>
module attributes {stable_mosaic.version = 11 : i64} {
  func.func @_linear_kernel(%arg0: i32, %arg1: memref<128x64xbf16, #tpu.memory_space<vmem>>, %arg2: memref<64x128xbf16, #tpu.memory_space<vmem>>, %arg3: memref<1x128xf32, #tpu.memory_space<vmem>>, %arg4: memref<128x128xf32, #tpu.memory_space<vmem>>) attributes {dimension_semantics = [#tpu.dimension_semantics<parallel>], iteration_bounds = array<i64: 1>, scalar_prefetch = 0 : i64, scratch_operands = 0 : i64, tpu.core_type = #tpu.core_type<tc>, window_params = [{transform_indices = @transform_0, window_bounds = array<i64: 128, 64>}, {pipeline_mode = #tpu.pipeline_mode<synchronous>, transform_indices = @transform_1, window_bounds = array<i64: 64, 128>}, {pipeline_mode = #tpu.pipeline_mode<synchronous>, transform_indices = @transform_2, window_bounds = array<i64: 1, 128>}, {transform_indices = @transform_3, window_bounds = array<i64: 128, 128>}]} {
    %c0 = arith.constant 0 : index
    %c0_0 = arith.constant 0 : index
    %0 = vector.load %arg1[%c0, %c0_0] : memref<128x64xbf16, #tpu.memory_space<vmem>>, vector<128x64xbf16>
    %c0_1 = arith.constant 0 : index
    %c0_2 = arith.constant 0 : index
    %1 = vector.load %arg2[%c0_1, %c0_2] : memref<64x128xbf16, #tpu.memory_space<vmem>>, vector<64x128xbf16>
    %cst = arith.constant dense<0.000000e+00> : vector<128x128xf32>
    %2 = tpu.matmul %0, %1, %cst {dimension_numbers = #tpu.dot_dimension_numbers<[1], [0], [0], [1], [0, 0, 1, 1], [], []>} : vector<128x64xbf16>, vector<64x128xbf16>, vector<128x128xf32> -> vector<128x128xf32>
    %c0_3 = arith.constant 0 : index
    %c0_4 = arith.constant 0 : index
    %3 = vector.load %arg3[%c0_3, %c0_4] : memref<1x128xf32, #tpu.memory_space<vmem>>, vector<1x128xf32>
    %4 = vector.broadcast %3 : vector<1x128xf32> to vector<128x128xf32>
    %5 = arith.addf %2, %4 : vector<128x128xf32>
    %c0_5 = arith.constant 0 : index
    %c0_6 = arith.constant 0 : index
    %6 = vector.load %arg4[%c0_5, %c0_6] : memref<128x128xf32, #tpu.memory_space<vmem>>, vector<128x128xf32>
    tpu.vector_store %arg4[%c0_5, %c0_6], %5 {strides = array<i32>} : memref<128x128xf32, #tpu.memory_space<vmem>>, vector<128x128xf32>,
    return
  }
  func.func @transform_0(%arg0: i32) -> (i32, i32) {
    %c0_i32 = arith.constant 0 : i32
    %c0_i32_0 = arith.constant 0 : i32
    return %arg0, %c0_i32 : i32, i32
  }
  func.func @transform_1(%arg0: i32) -> (i32, i32) {
    %c0_i32 = arith.constant 0 : i32
    %c0_i32_0 = arith.constant 0 : i32
    %c0_i32_1 = arith.constant 0 : i32
    return %c0_i32, %c0_i32_0 : i32, i32
  }
  func.func @transform_2(%arg0: i32) -> (i32, i32) {
    %c0_i32 = arith.constant 0 : i32
    %c0_i32_0 = arith.constant 0 : i32
    %c0_i32_1 = arith.constant 0 : i32
    return %c0_i32, %c0_i32_0 : i32, i32
  }
  func.func @transform_3(%arg0: i32) -> (i32, i32) {
    %c0_i32 = arith.constant 0 : i32
    %c0_i32_0 = arith.constant 0 : i32
    return %arg0, %c0_i32 : i32, i32
  }
}

</mosaic_0001>

<bundles_post_ra>
// kernel: _flatten_embedding_forward.1
= control target key start
LH: loop header
LB: loop body
LE: loop exit
PB: predicated region body
PF: predicated region fallthrough
CT: control target
= control target key end

     0   :  { %vm110_vm0 = vcmask 523264   ;;  %s444_s1 = inlined_call_operand.vmem [shape: bf16[64,128], index: 1, kind: input, shape index: {}]   ;;  %s445_s0 = inlined_call_operand.vmem [shape: bf16[128,64], index: 0, kind: input, shape index: {}]   ;;  %s446_s2 = inlined_call_operand.vmem [shape: f32[1,128], index: 2, kind: input, shape index: {}]   ;;  %s447_s3 = inlined_call_operand.vmem [shape: f32[128,128], index: 3, kind: output, shape index: {}]  }
   0x1   :  { %v317_v0 = vld [vmem:[%s444_s1] sm:$0xff]   ;;  %v318_v1 = vld [vmem:[%s444_s1 + $0x8] sm:$0xff]   ;;  %v319_v2 = vld [vmem:[%s444_s1 + $0x10] sm:$0xff]  }
   0x2   :  { %285 = vmatprep.subr.bf16.mxu0 %v317_v0  ;;  %309 = vmatprep.subr.bf16.mxu1 %v317_v0  ;;  %v321_v3 = vld [vmem:[%s445_s0] sm:$0xff]   ;;  %v320_v5 = vld [vmem:[%s444_s1 + $0x18] sm:$0xff]   ;;  %v323_v6 = vld [vmem:[%s445_s0 + $0x8] sm:$0xff]  }
   0x3   :  { %286 = vmatpush3.bf16.msra.mxu0 %v317_v0  ;;  %313 = vmatpush3.bf16.msra.mxu1 %v317_v0  ;;  %v322_v4 = vld [vmem:[%s445_s0 + $0x20] sm:$0xff]   ;;  %v324_v7 = vld [vmem:[%s445_s0 + $0x28] sm:$0xff]   ;;  %v325_v8 = vld [vmem:[%s445_s0 + $0x10] sm:$0xff]  }
   0x4   :  { %287 = vmatprep.subr.bf16.mxu0 %v318_v1  ;;  %310 = vmatprep.subr.bf16.mxu1 %v318_v1  ;;  %v326_v9 = vld [vmem:[%s445_s0 + $0x30] sm:$0xff]   ;;  %v327_v10 = vld [vmem:[%s445_s0 + $0x18] sm:$0xff]   ;;  %v252_v12 = vld [vmem:[%s446_s2] ss:$0 sm:$0xff] }
   0x5   :  { %293 = vmatprep.mubr.msk.bf16.mxu0 %vm110_vm0, %v321_v3  ;;  %301 = vmatprep.mubr.msk.bf16.mxu1 %vm110_vm0, %v322_v4  ;;  %v328_v11 = vld [vmem:[%s445_s0 + $0x38] sm:$0xff]  }
   0x7   :  { %288 = vmatpush3.bf16.msra.mxu0 %v318_v1  ;;  %314 = vmatpush3.bf16.msra.mxu1 %v318_v1 }
   0x8   :  { %289 = vmatprep.subr.bf16.mxu0 %v319_v2  ;;  %311 = vmatprep.subr.bf16.mxu1 %v319_v2 }
   0xb   :  { %290 = vmatpush3.bf16.msra.mxu0 %v319_v2  ;;  %315 = vmatpush3.bf16.msra.mxu1 %v319_v2 }
   0xc   :  { %291 = vmatprep.subr.bf16.mxu0 %v320_v5  ;;  %312 = vmatprep.subr.bf16.mxu1 %v320_v5 }
   0xf   :  { %292 = vmatpush3.bf16.msra.mxu0 %v320_v5  ;;  %316 = vmatpush3.bf16.msra.mxu1 %v320_v5 }
  0x12   :  { %294 = vmatmul.mubr.msk.bf16.vlgmr.msra.gmra.mrb[0].mxu0 %vm110_vm0, %v323_v6  ;;  %302 = vmatmul.mubr.msk.bf16.vlgmr.msra.gmra.mrb[0].mxu1 %vm110_vm0, %v324_v7 }
  0x13   :  { %297 = vmatprep.mubr.msk.bf16.mxu0 %vm110_vm0, %v325_v8  ;;  %305 = vmatprep.mubr.msk.bf16.mxu1 %vm110_vm0, %v326_v9 }
  0x1a   :  { %298 = vmatmul.mubr.msk.bf16.gmra.mrb[4].mxu0 %vm110_vm0, %v327_v10  ;;  %306 = vmatmul.mubr.msk.bf16.gmra.mrb[4].mxu1 %vm110_vm0, %v328_v11 }
  0xe5   :  { %v295_v13 = vpop.f32.mrb[0].mxu0  ;;  %v303_v14 = vpop.f32.mrb[0].mxu1 }
  0xe6   :  { %v178_v15 = vadd.f32 %v295_v13, %v252_v12  ;;  %v210_v16 = vadd.f32 %v303_v14, %v252_v12  ;;  %v169_v17 = vpop.f32.mrb[1].mxu0  ;;  %v201_v18 = vpop.f32.mrb[1].mxu1 }
  0xe7   :  { %v170_v19 = vadd.f32 %v252_v12, %v169_v17  ;;  %v202_v20 = vadd.f32 %v252_v12, %v201_v18  ;;  %v296_v21 = vpop.f32.mrb[2].mxu0  ;;  %v304_v22 = vpop.f32.mrb[2].mxu1 }
  0xe8   :  { %234 = vst [vmem:[%s447_s3 + $0x10] sm:$0xff] %v178_v15  ;;  %242 = vst [vmem:[%s447_s3 + $0x50] sm:$0xff] %v210_v16  ;;  %v181_v23 = vadd.f32 %v296_v21, %v252_v12  ;;  %v213_v24 = vadd.f32 %v304_v22, %v252_v12  ;;  %v172_v25 = vpop.f32.mrb[3].mxu0  ;;  %v204_v26 = vpop.f32.mrb[3].mxu1 }
  0xe9   :  { %232 = vst [vmem:[%s447_s3] sm:$0xff] %v170_v19  ;;  %240 = vst [vmem:[%s447_s3 + $0x40] sm:$0xff] %v202_v20  ;;  %v173_v27 = vadd.f32 %v252_v12, %v172_v25  ;;  %v205_v28 = vadd.f32 %v252_v12, %v204_v26 }
  0xea   :  { %235 = vst [vmem:[%s447_s3 + $0x18] sm:$0xff] %v181_v23  ;;  %243 = vst [vmem:[%s447_s3 + $0x58] sm:$0xff] %v213_v24 }
  0xeb   :  { %233 = vst [vmem:[%s447_s3 + $0x8] sm:$0xff] %v173_v27  ;;  %241 = vst [vmem:[%s447_s3 + $0x48] sm:$0xff] %v205_v28 }
  0xed   :  { %v299_v29 = vpop.f32.mrb[4].mxu0  ;;  %v307_v30 = vpop.f32.mrb[4].mxu1 }
  0xee   :  { %v194_v31 = vadd.f32 %v299_v29, %v252_v12  ;;  %v226_v32 = vadd.f32 %v307_v30, %v252_v12  ;;  %v185_v33 = vpop.f32.mrb[5].mxu0  ;;  %v217_v34 = vpop.f32.mrb[5].mxu1 }
  0xef   :  { %v186_v35 = vadd.f32 %v252_v12, %v185_v33  ;;  %v218_v36 = vadd.f32 %v252_v12, %v217_v34  ;;  %v300_v37 = vpop.f32.mrb[6].mxu0  ;;  %v308_v38 = vpop.f32.mrb[6].mxu1 }
  0xf0   :  { %238 = vst [vmem:[%s447_s3 + $0x30] sm:$0xff] %v194_v31  ;;  %246 = vst [vmem:[%s447_s3 + $0x70] sm:$0xff] %v226_v32  ;;  %v197_v39 = vadd.f32 %v300_v37, %v252_v12  ;;  %v229_v40 = vadd.f32 %v308_v38, %v252_v12  ;;  %v188_v41 = vpop.f32.mrb[7].mxu0  ;;  %v220_v42 = vpop.f32.mrb[7].mxu1 }
  0xf1   :  { %236 = vst [vmem:[%s447_s3 + $0x20] sm:$0xff] %v186_v35  ;;  %244 = vst [vmem:[%s447_s3 + $0x60] sm:$0xff] %v218_v36  ;;  %v189_v43 = vadd.f32 %v252_v12, %v188_v41  ;;  %v221_v44 = vadd.f32 %v252_v12, %v220_v42 }
  0xf2   :  { %239 = vst [vmem:[%s447_s3 + $0x38] sm:$0xff] %v197_v39  ;;  %247 = vst [vmem:[%s447_s3 + $0x78] sm:$0xff] %v229_v40 }
  0xf3   :  { %237 = vst [vmem:[%s447_s3 + $0x28] sm:$0xff] %v189_v43  ;;  %245 = vst [vmem:[%s447_s3 + $0x68] sm:$0xff] %v221_v44 }

</bundles_post_ra>
